<compile_context>
chip_gen: v6e
topology: v6e:2x2x1
jax: 0.10.0
libtpu: 0.0.40
codegen_flags: <defaults>
</compile_context>

<pallas_src>
import math

import jax
import jax.numpy as jnp
import numpy as np
from jax.experimental import pallas as pl
from jax.experimental.pallas import tpu as pltpu


def _node_generation_kernel(ne_ref, cc_ref, emb_ref,
                            w_ne_ref, w_cc_ref, w_emb_ref, b_ref,
                            l_ref, r_ref):
    """One batch block: fused 4-gate matmul (split over the concat axis),
    then the gated-tanh children."""
    H = l_ref.shape[-1]
    # (blk, H)@(H, 4H) + (blk, H)@(H, 4H) + (blk, E)@(E, 4H)  ==
    # (blk, 2H+E)@(2H+E, 4H)  of the reference (concat expressed as a sum of
    # partial matmuls -> no HBM / lane concat needed).
    y = jnp.dot(ne_ref[...], w_ne_ref[...], preferred_element_type=jnp.float32)
    y = y + jnp.dot(cc_ref[...], w_cc_ref[...], preferred_element_type=jnp.float32)
    y = y + jnp.dot(emb_ref[...], w_emb_ref[...], preferred_element_type=jnp.float32)
    y = y + b_ref[...]
    # Fused gate layout along lanes: [ l | lg | r | rg ], each H wide.
    l_ref[...] = (jnp.tanh(y[:, 0 * H:1 * H])
                  * jax.nn.sigmoid(y[:, 1 * H:2 * H])).astype(l_ref.dtype)
    r_ref[...] = (jnp.tanh(y[:, 2 * H:3 * H])
                  * jax.nn.sigmoid(y[:, 3 * H:4 * H])).astype(r_ref.dtype)


def seq2tree_node_generation(node_embedding, node_label, current_context,
                             params, *, block_b=128):
    """node_embedding: (B,1,H), node_label: (B,) int32, current_context: (B,1,H).
    Returns (l_child (B,H), r_child (B,H), node_label_ (B,E))."""
    emb_table = params["embeddings"]                               # (op_nums, E)
    # Embedding lookup (integer gather) is plain-JAX glue; em_dropout is the
    # identity in eval mode, so node_label_ is both the returned value and the
    # gate input.
    node_label_ = jnp.take(emb_table, node_label, axis=0)          # (B, E)
    ne = node_embedding.reshape(node_embedding.shape[0], -1).astype(jnp.float32)
    cc = current_context.reshape(current_context.shape[0], -1).astype(jnp.float32)
    emb = node_label_.astype(jnp.float32)

    B, H = ne.shape
    E = emb.shape[1]
    w_ne, w_cc, w_emb = params["w_ne"], params["w_cc"], params["w_emb"]
    b4 = params["b_fused"]                                         # (1, 4H)

    # Sublane-aligned batch block; pad ragged batches with zero rows.
    blk = min(block_b, B)
    blk = max(8, -(-blk // 8) * 8)
    num_blocks = pl.cdiv(B, blk)
    Bp = num_blocks * blk
    if Bp != B:
        pad = ((0, Bp - B), (0, 0))
        ne, cc, emb = jnp.pad(ne, pad), jnp.pad(cc, pad), jnp.pad(emb, pad)

    l, r = pl.pallas_call(
        _node_generation_kernel,
        out_shape=(jax.ShapeDtypeStruct((Bp, H), jnp.float32),
                   jax.ShapeDtypeStruct((Bp, H), jnp.float32)),
        grid_spec=pltpu.PrefetchScalarGridSpec(
            num_scalar_prefetch=0,
            grid=(num_blocks,),
            in_specs=[
                pl.BlockSpec((blk, H), lambda i: (i, 0)),          # node_embedding blocks
                pl.BlockSpec((blk, H), lambda i: (i, 0)),          # current_context blocks
                pl.BlockSpec((blk, E), lambda i: (i, 0)),          # node_label_ blocks
                pl.BlockSpec((H, 4 * H), lambda i: (0, 0)),        # resident weights
                pl.BlockSpec((H, 4 * H), lambda i: (0, 0)),
                pl.BlockSpec((E, 4 * H), lambda i: (0, 0)),
                pl.BlockSpec((1, 4 * H), lambda i: (0, 0)),        # resident bias
            ],
            out_specs=(
                pl.BlockSpec((blk, H), lambda i: (i, 0)),
                pl.BlockSpec((blk, H), lambda i: (i, 0)),
            ),
        ),
        compiler_params=pltpu.CompilerParams(
            dimension_semantics=("parallel",)),                    # shard blocks across TCs
    )(ne, cc, emb, w_ne, w_cc, w_emb, b4)

    if Bp != B:
        l, r = l[:B], r[:B]
    return l, r, node_label_


def init_params(key, hidden_size, op_nums, embedding_size):
    """Mimic PyTorch defaults: Embedding ~ N(0,1), Linear ~ U(-1/sqrt(fan_in), .)."""
    H, E = hidden_size, embedding_size
    ks = jax.random.split(key, 9)
    emb = jax.random.normal(ks[0], (op_nums, E), jnp.float32)

    def lin(kw, kb, din, dout):
        bound = 1.0 / math.sqrt(din)
        w = jax.random.uniform(kw, (din, dout), jnp.float32, -bound, bound)
        b = jax.random.uniform(kb, (dout,), jnp.float32, -bound, bound)
        return w, b

    din = 2 * H + E
    wl, bl = lin(ks[1], ks[2], din, H)      # generate_l
    wlg, blg = lin(ks[3], ks[4], din, H)    # generate_lg
    wr, br = lin(ks[5], ks[6], din, H)      # generate_r
    wrg, brg = lin(ks[7], ks[8], din, H)    # generate_rg

    # Fused gate weight, lane layout [ l | lg | r | rg ], then split along the
    # K (concat) axis into the node_embedding / current_context / label blocks.
    w_fused = jnp.concatenate([wl, wlg, wr, wrg], axis=1)          # (din, 4H)
    w_ne = w_fused[:H]                                             # (H, 4H)
    w_cc = w_fused[H:2 * H]                                        # (H, 4H)
    w_emb = w_fused[2 * H:2 * H + E]                               # (E, 4H)
    b_fused = jnp.concatenate([bl, blg, br, brg])[None, :]         # (1, 4H)

    return dict(embeddings=emb,
                wl=wl, bl=bl, wlg=wlg, blg=blg,
                wr=wr, br=br, wrg=wrg, brg=brg,
                w_ne=w_ne, w_cc=w_cc, w_emb=w_emb, b_fused=b_fused)


def _reference(node_embedding, node_label, current_context, p):
    """Pure-JAX reference matching the PyTorch forward (eval mode)."""
    node_label_ = p["embeddings"][node_label]
    ne = node_embedding[:, 0, :]
    cc = current_context[:, 0, :]
    x = jnp.concatenate([ne, cc, node_label_], axis=1)
    l = jnp.tanh(x @ p["wl"] + p["bl"]) * jax.nn.sigmoid(x @ p["wlg"] + p["blg"])
    r = jnp.tanh(x @ p["wr"] + p["br"]) * jax.nn.sigmoid(x @ p["wrg"] + p["brg"])
    return l, r, node_label_


if __name__ == "__main__":
    # Small deterministic example shapes consistent with the module.
    B, H, E, OPS = 16, 32, 24, 8

    key = jax.random.PRNGKey(0)
    kp, kn, kc, kl = jax.random.split(key, 4)

    params = init_params(kp, H, OPS, E)
    node_embedding = jax.random.normal(kn, (B, 1, H), jnp.float32)
    current_context = jax.random.normal(kc, (B, 1, H), jnp.float32)
    node_label = jax.random.randint(kl, (B,), 0, OPS, jnp.int32)

    l, r, lbl = seq2tree_node_generation(node_embedding, node_label,
                                         current_context, params)
    l, r, lbl = jax.block_until_ready((l, r, lbl))

    rl, rr, rlbl = _reference(node_embedding, node_label, current_context, params)
    np.testing.assert_allclose(np.asarray(l), np.asarray(rl), rtol=1e-4, atol=1e-4)
    np.testing.assert_allclose(np.asarray(r), np.asarray(rr), rtol=1e-4, atol=1e-4)
    np.testing.assert_allclose(np.asarray(lbl), np.asarray(rlbl), rtol=0, atol=0)
    assert l.shape == (B, H) and r.shape == (B, H) and lbl.shape == (B, E)
    print("KERNEL_OK")
</pallas_src>

<mosaic_0001>
module attributes {stable_mosaic.version = 11 : i64} {
  func.func @_node_generation_kernel(%arg0: i32, %arg1: memref<16x32xf32, #tpu.memory_space<vmem>>, %arg2: memref<16x32xf32, #tpu.memory_space<vmem>>, %arg3: memref<16x24xf32, #tpu.memory_space<vmem>>, %arg4: memref<32x128xf32, #tpu.memory_space<vmem>>, %arg5: memref<32x128xf32, #tpu.memory_space<vmem>>, %arg6: memref<24x128xf32, #tpu.memory_space<vmem>>, %arg7: memref<1x128xf32, #tpu.memory_space<vmem>>, %arg8: memref<16x32xf32, #tpu.memory_space<vmem>>, %arg9: memref<16x32xf32, #tpu.memory_space<vmem>>) attributes {dimension_semantics = [#tpu.dimension_semantics<parallel>], iteration_bounds = array<i64: 1>, scalar_prefetch = 0 : i64, scratch_operands = 0 : i64, tpu.core_type = #tpu.core_type<tc>, window_params = [{transform_indices = @transform_0, window_bounds = array<i64: 16, 32>}, {transform_indices = @transform_1, window_bounds = array<i64: 16, 32>}, {transform_indices = @transform_2, window_bounds = array<i64: 16, 24>}, {pipeline_mode = #tpu.pipeline_mode<synchronous>, transform_indices = @transform_3, window_bounds = array<i64: 32, 128>}, {pipeline_mode = #tpu.pipeline_mode<synchronous>, transform_indices = @transform_4, window_bounds = array<i64: 32, 128>}, {pipeline_mode = #tpu.pipeline_mode<synchronous>, transform_indices = @transform_5, window_bounds = array<i64: 24, 128>}, {pipeline_mode = #tpu.pipeline_mode<synchronous>, transform_indices = @transform_6, window_bounds = array<i64: 1, 128>}, {transform_indices = @transform_7, window_bounds = array<i64: 16, 32>}, {transform_indices = @transform_8, window_bounds = array<i64: 16, 32>}]} {
    %c0 = arith.constant 0 : index
    %c0_0 = arith.constant 0 : index
    %0 = vector.load %arg1[%c0, %c0_0] : memref<16x32xf32, #tpu.memory_space<vmem>>, vector<16x32xf32>
    %c0_1 = arith.constant 0 : index
    %c0_2 = arith.constant 0 : index
    %1 = vector.load %arg4[%c0_1, %c0_2] : memref<32x128xf32, #tpu.memory_space<vmem>>, vector<32x128xf32>
    %cst = arith.constant dense<0.000000e+00> : vector<16x128xf32>
    %2 = tpu.matmul %0, %1, %cst {dimension_numbers = #tpu.dot_dimension_numbers<[1], [0], [0], [1], [0, 0, 1, 1], [], []>} : vector<16x32xf32>, vector<32x128xf32>, vector<16x128xf32> -> vector<16x128xf32>
    %c0_3 = arith.constant 0 : index
    %c0_4 = arith.constant 0 : index
    %3 = vector.load %arg2[%c0_3, %c0_4] : memref<16x32xf32, #tpu.memory_space<vmem>>, vector<16x32xf32>
    %c0_5 = arith.constant 0 : index
    %c0_6 = arith.constant 0 : index
    %4 = vector.load %arg5[%c0_5, %c0_6] : memref<32x128xf32, #tpu.memory_space<vmem>>, vector<32x128xf32>
    %cst_7 = arith.constant dense<0.000000e+00> : vector<16x128xf32>
    %5 = tpu.matmul %3, %4, %cst_7 {dimension_numbers = #tpu.dot_dimension_numbers<[1], [0], [0], [1], [0, 0, 1, 1], [], []>} : vector<16x32xf32>, vector<32x128xf32>, vector<16x128xf32> -> vector<16x128xf32>
    %6 = arith.addf %2, %5 : vector<16x128xf32>
    %c0_8 = arith.constant 0 : index
    %c0_9 = arith.constant 0 : index
    %7 = vector.load %arg3[%c0_8, %c0_9] : memref<16x24xf32, #tpu.memory_space<vmem>>, vector<16x24xf32>
    %c0_10 = arith.constant 0 : index
    %c0_11 = arith.constant 0 : index
    %8 = vector.load %arg6[%c0_10, %c0_11] : memref<24x128xf32, #tpu.memory_space<vmem>>, vector<24x128xf32>
    %cst_12 = arith.constant dense<0.000000e+00> : vector<16x128xf32>
    %9 = tpu.matmul %7, %8, %cst_12 {dimension_numbers = #tpu.dot_dimension_numbers<[1], [0], [0], [1], [0, 0, 1, 1], [], []>} : vector<16x24xf32>, vector<24x128xf32>, vector<16x128xf32> -> vector<16x128xf32>
    %10 = arith.addf %6, %9 : vector<16x128xf32>
    %c0_13 = arith.constant 0 : index
    %c0_14 = arith.constant 0 : index
    %11 = vector.load %arg7[%c0_13, %c0_14] : memref<1x128xf32, #tpu.memory_space<vmem>>, vector<1x128xf32>
    %12 = vector.broadcast %11 : vector<1x128xf32> to vector<16x128xf32>
    %13 = arith.addf %10, %12 : vector<16x128xf32>
    %14 = vector.extract_strided_slice %13 {offsets = [0, 0], sizes = [16, 32], strides = [1, 1]} : vector<16x128xf32> to vector<16x32xf32>
    %15 = math.tanh %14 : vector<16x32xf32>
    %16 = vector.extract_strided_slice %13 {offsets = [0, 32], sizes = [16, 32], strides = [1, 1]} : vector<16x128xf32> to vector<16x32xf32>
    %17 = arith.negf %16 : vector<16x32xf32>
    %18 = math.exp %17 : vector<16x32xf32>
    %cst_15 = arith.constant 1.000000e+00 : f32
    %19 = vector.broadcast %cst_15 : f32 to vector<16x32xf32>
    %20 = arith.addf %19, %18 : vector<16x32xf32>
    %21 = arith.divf %19, %20 : vector<16x32xf32>
    %22 = arith.mulf %15, %21 : vector<16x32xf32>
    %c0_16 = arith.constant 0 : index
    %c0_17 = arith.constant 0 : index
    %23 = vector.load %arg8[%c0_16, %c0_17] : memref<16x32xf32, #tpu.memory_space<vmem>>, vector<16x32xf32>
    tpu.vector_store %arg8[%c0_16, %c0_17], %22 {strides = array<i32>} : memref<16x32xf32, #tpu.memory_space<vmem>>, vector<16x32xf32>,
    %24 = vector.extract_strided_slice %13 {offsets = [0, 64], sizes = [16, 32], strides = [1, 1]} : vector<16x128xf32> to vector<16x32xf32>
    %25 = math.tanh %24 : vector<16x32xf32>
    %26 = vector.extract_strided_slice %13 {offsets = [0, 96], sizes = [16, 32], strides = [1, 1]} : vector<16x128xf32> to vector<16x32xf32>
    %27 = arith.negf %26 : vector<16x32xf32>
    %28 = math.exp %27 : vector<16x32xf32>
    %cst_18 = arith.constant 1.000000e+00 : f32
    %29 = vector.broadcast %cst_18 : f32 to vector<16x32xf32>
    %30 = arith.addf %29, %28 : vector<16x32xf32>
    %31 = arith.divf %29, %30 : vector<16x32xf32>
    %32 = arith.mulf %25, %31 : vector<16x32xf32>
    %c0_19 = arith.constant 0 : index
    %c0_20 = arith.constant 0 : index
    %33 = vector.load %arg9[%c0_19, %c0_20] : memref<16x32xf32, #tpu.memory_space<vmem>>, vector<16x32xf32>
    tpu.vector_store %arg9[%c0_19, %c0_20], %32 {strides = array<i32>} : memref<16x32xf32, #tpu.memory_space<vmem>>, vector<16x32xf32>,
    return
  }
  func.func @transform_0(%arg0: i32) -> (i32, i32) {
    %c0_i32 = arith.constant 0 : i32
    %c0_i32_0 = arith.constant 0 : i32
    return %arg0, %c0_i32 : i32, i32
  }
  func.func @transform_1(%arg0: i32) -> (i32, i32) {
    %c0_i32 = arith.constant 0 : i32
    %c0_i32_0 = arith.constant 0 : i32
    return %arg0, %c0_i32 : i32, i32
  }
  func.func @transform_2(%arg0: i32) -> (i32, i32) {
    %c0_i32 = arith.constant 0 : i32
    %c0_i32_0 = arith.constant 0 : i32
    return %arg0, %c0_i32 : i32, i32
  }
  func.func @transform_3(%arg0: i32) -> (i32, i32) {
    %c0_i32 = arith.constant 0 : i32
    %c0_i32_0 = arith.constant 0 : i32
    %c0_i32_1 = arith.constant 0 : i32
    return %c0_i32, %c0_i32_0 : i32, i32
  }
  func.func @transform_4(%arg0: i32) -> (i32, i32) {
    %c0_i32 = arith.constant 0 : i32
    %c0_i32_0 = arith.constant 0 : i32
    %c0_i32_1 = arith.constant 0 : i32
    return %c0_i32, %c0_i32_0 : i32, i32
  }
  func.func @transform_5(%arg0: i32) -> (i32, i32) {
    %c0_i32 = arith.constant 0 : i32
    %c0_i32_0 = arith.constant 0 : i32
    %c0_i32_1 = arith.constant 0 : i32
    return %c0_i32, %c0_i32_0 : i32, i32
  }
  func.func @transform_6(%arg0: i32) -> (i32, i32) {
    %c0_i32 = arith.constant 0 : i32
    %c0_i32_0 = arith.constant 0 : i32
    %c0_i32_1 = arith.constant 0 : i32
    return %c0_i32, %c0_i32_0 : i32, i32
  }
  func.func @transform_7(%arg0: i32) -> (i32, i32) {
    %c0_i32 = arith.constant 0 : i32
    %c0_i32_0 = arith.constant 0 : i32
    return %arg0, %c0_i32 : i32, i32
  }
  func.func @transform_8(%arg0: i32) -> (i32, i32) {
    %c0_i32 = arith.constant 0 : i32
    %c0_i32_0 = arith.constant 0 : i32
    return %arg0, %c0_i32 : i32, i32
  }
}

</mosaic_0001>

<bundles_post_ra>
// kernel: tpu_custom_call.1
= control target key start
LH: loop header
LB: loop body
LE: loop exit
PB: predicated region body
PF: predicated region fallthrough
CT: control target
= control target key end

     0   :  { %14 = vsyncpa [#allocation3], 0  ;;  %s826_s0 = inlined_call_operand.hbm [shape: f32[16,32], index: 0, kind: input, shape index: {}]   ;;  %s827_s1 = inlined_call_operand.hbm [shape: f32[16,32], index: 1, kind: input, shape index: {}]   ;;  %s828_s2 = inlined_call_operand.hbm [shape: f32[16,24], index: 2, kind: input, shape index: {}]   ;;  %s829_s3 = inlined_call_operand.hbm [shape: f32[32,128], index: 3, kind: input, shape index: {}]   ;;  %s830_s4 = inlined_call_operand.hbm [shape: f32[32,128], index: 4, kind: input, shape index: {}]   ;;  %s831_s5 = inlined_call_operand.hbm [shape: f32[24,128], index: 5, kind: input, shape index: {}]   ;;  %s832_s6 = inlined_call_operand.vmem [shape: f32[1,128], index: 6, kind: input, shape index: {}]   ;;  %s833_s7 = inlined_call_operand.hbm [shape: f32[16,32], index: 7, kind: output, shape index: {0}]   ;;  %s834_s8 = inlined_call_operand.hbm [shape: f32[16,32], index: 8, kind: output, shape index: {1}]  }
   0x1   :  { %15 = vsyncpa [#allocation6], 0 }
   0x2   :  { %16 = vsyncpa [#allocation9], 0 }
   0x3   :  { %17 = vsyncpa [#allocation12], 0 }
   0x4   :  { %18 = vsyncpa [#allocation4], 0 }
   0x5   :  { %19 = vsyncpa [#allocation15], 0  ;;  %s710_s27 = smov [#allocation5]   ;;  %s711_s29 = smov [#allocation8]  }
   0x6   :  { %s37_s28 = sshll.u32 %s710_s27, 4  ;;  %s61_s30 = sshll.u32 %s711_s29, 4  ;;  %s38_s28 = int_to_ptr.vmem [resolvable:$true] %s37_s28  ;;  %s62_s30 = int_to_ptr.vmem [resolvable:$true] %s61_s30 }
   0x7   :  { %s546_s9 = scalar_lea.vmem %s38_s28, 256  ;;  %p551_p1 = scmp.lt.s32.totalorder %s38_s28, %s38_s28 }
   0x8   :  { %p547_p0 = scmp.ne.s32.totalorder %s38_s28, %s546_s9  ;;  %p552_p2 = scmp.lt.s32.totalorder %s546_s9, %s546_s9 }
   0xa   :  { %p553_p3 = por %p552_p2, %p551_p1 }
   0xc   :  { %p554_p4 = pnand %p553_p3, %p547_p0 }
   0xe   :  { %557 = shalt.err (!%p554_p4)
}
   0xf   :  { %s712_s10 = smov 128   ;;  %s713_s11 = smov 8  }
  0x10   :  { %43 = dma.hbm_to_vmem [thread:$0]  %s827_s1, 256, %s38_s28, [#allocation6], %s712_s10, %s712_s10, %s713_s11  }
  0x11   :  { %s566_s14 = scalar_lea.vmem %s62_s30, 512  ;;  %p571_p6 = scmp.lt.s32.totalorder %s62_s30, %s62_s30 }
  0x12   :  { %p567_p5 = scmp.ne.s32.totalorder %s62_s30, %s566_s14  ;;  %p572_p7 = scmp.lt.s32.totalorder %s566_s14, %s566_s14 }
  0x14   :  { %p573_p8 = por %p572_p7, %p571_p6 }
  0x16   :  { %p574_p9 = pnand %p573_p8, %p567_p5 }
  0x18   :  { %577 = shalt.err (!%p574_p9)
}
  0x19   :  { %67 = dma.hbm_to_vmem [thread:$0]  %s829_s3, 512, %s62_s30, [#allocation9], %s712_s10, %s712_s10, %s713_s11  }
  0x1a   :  { %s714_s17 = smov [#allocation2]   ;;  %s715_s19 = smov [#allocation7]  }
  0x1b   :  { %s25_s18 = sshll.u32 %s714_s17, 4  ;;  %s49_s20 = sshll.u32 %s715_s19, 4  ;;  %s26_s18 = int_to_ptr.vmem [resolvable:$true] %s25_s18  ;;  %s50_s20 = int_to_ptr.vmem [resolvable:$true] %s49_s20 }
  0x1c   :  { %s586_s1 = scalar_lea.vmem %s26_s18, 256  ;;  %p591_p11 = scmp.lt.s32.totalorder %s26_s18, %s26_s18 }
  0x1d   :  { %p587_p10 = scmp.ne.s32.totalorder %s26_s18, %s586_s1  ;;  %p592_p12 = scmp.lt.s32.totalorder %s586_s1, %s586_s1 }
  0x1f   :  { %p593_p13 = por %p592_p12, %p591_p11 }
  0x21   :  { %p594_p0 = pnand %p593_p13, %p587_p10 }
  0x23   :  { %597 = shalt.err (!%p594_p0)
}
  0x24   :  { %31 = dma.hbm_to_vmem [thread:$0]  %s826_s0, 256, %s26_s18, [#allocation3], %s712_s10, %s712_s10, %s713_s11  }
  0x25   :  { %s606_s3 = scalar_lea.vmem %s50_s20, 256  ;;  %p611_p2 = scmp.lt.s32.totalorder %s50_s20, %s50_s20 }
  0x26   :  { %p607_p1 = scmp.ne.s32.totalorder %s50_s20, %s606_s3  ;;  %p612_p3 = scmp.lt.s32.totalorder %s606_s3, %s606_s3 }
  0x28   :  { %p613_p4 = por %p612_p3, %p611_p2 }
  0x2a   :  { %p614_p5 = pnand %p613_p4, %p607_p1 }
  0x2c   :  { %617 = shalt.err (!%p614_p5)
}
  0x2d   :  { %55 = dma.hbm_to_vmem [thread:$0]  %s828_s2, 256, %s50_s20, [#allocation6], %s712_s10, %s712_s10, %s713_s11  }
  0x2e   :  { %s716_s25 = smov [#allocation10]   ;;  %s717_s27 = smov [#allocation11]  }
  0x2f   :  { %s73_s26 = sshll.u32 %s716_s25, 4  ;;  %s85_s28 = sshll.u32 %s717_s27, 4  ;;  %s74_s26 = int_to_ptr.vmem [resolvable:$true] %s73_s26  ;;  %s86_s28 = int_to_ptr.vmem [resolvable:$true] %s85_s28 }
  0x30   :  { %s626_s0 = scalar_lea.vmem %s74_s26, 512  ;;  %p631_p7 = scmp.lt.s32.totalorder %s74_s26, %s74_s26 }
  0x31   :  { %p627_p6 = scmp.ne.s32.totalorder %s74_s26, %s626_s0  ;;  %p632_p8 = scmp.lt.s32.totalorder %s626_s0, %s626_s0 }
  0x33   :  { %p633_p9 = por %p632_p8, %p631_p7 }
  0x35   :  { %p634_p10 = pnand %p633_p9, %p627_p6 }
  0x37   :  { %637 = shalt.err (!%p634_p10)
}
  0x38   :  { %79 = dma.hbm_to_vmem [thread:$0]  %s830_s4, 512, %s74_s26, [#allocation9], %s712_s10, %s712_s10, %s713_s11  }
  0x39   :  { %s646_s2 = scalar_lea.vmem %s86_s28, 384  ;;  %p651_p12 = scmp.lt.s32.totalorder %s86_s28, %s86_s28 }
  0x3a   :  { %p647_p11 = scmp.ne.s32.totalorder %s86_s28, %s646_s2  ;;  %p652_p13 = scmp.lt.s32.totalorder %s646_s2, %s646_s2 }
  0x3c   :  { %p653_p0 = por %p652_p13, %p651_p12 }
  0x3e   :  { %p654_p1 = pnand %p653_p0, %p647_p11 }
  0x40   :  { %657 = shalt.err (!%p654_p1)
}
  0x41   :  { %91 = dma.hbm_to_vmem [thread:$0]  %s831_s5, 384, %s86_s28, [#allocation12], %s712_s10, %s712_s10, %s713_s11  }
  0x42   :  { %698 = dma.done.wait [#allocation3], 256  }
  0x43   :  { %699 = vsyncadd [#allocation3], 4294967040 }
  0x44   :  { %700 = dma.done.wait [#allocation6], 512  }
  0x45   :  { %701 = vsyncadd [#allocation6], 4294966784 }
  0x46   :  { %702 = dma.done.wait [#allocation9], 1024  }
  0x47   :  { %703 = vsyncadd [#allocation9], 4294966272 }
  0x48   :  { %704 = dma.done.wait [#allocation12], 384  }
  0x49   :  { %705 = vsyncadd [#allocation12], 4294966912  ;;  %v123_v0 = vld [vmem:[#allocation10 + $0x18] sm:$0xff]  ;;  %v122_v2 = vld [vmem:[#allocation10 + $0x10] sm:$0xff]  ;;  %vm124_vm0 = vcmask 261120   ;;  %vm292_vm1 = vcmask 195584  }
  0x4a   :  { %v117_v1 = vld [vmem:[#allocation8 + $0x18] sm:$0xff]  ;;  %483 = vmatprep.subr.mxu0 %v123_v0  ;;  %v116_v3 = vld [vmem:[#allocation8 + $0x10] sm:$0xff]  ;;  %v121_v4 = vld [vmem:[#allocation10 + $0x8] sm:$0xff]  ;;  %s718_s13 = smov 96   ;;  %s720_s15 = smov 64  }
  0x4b   :  { %494 = vmatprep.subr.mxu1 %v117_v1  ;;  %484 = vmatpush3.msra.mxu0 %v123_v0  ;;  %v115_v5 = vld [vmem:[#allocation8 + $0x8] sm:$0xff]  ;;  %v120_v6 = vld [vmem:[#allocation10] sm:$0xff]  ;;  %v112_v9 = vld [vmem:[#allocation2] sm:$0xff] }
  0x4c   :  { %495 = vmatpush3.msra.mxu1 %v117_v1  ;;  %485 = vmatprep.subr.mxu0 %v122_v2  ;;  %v114_v7 = vld [vmem:[#allocation8] sm:$0xff]  ;;  %v119_v10 = vld [vmem:[#allocation5 + $0x8] sm:$0xff]  ;;  %v113_v11 = vld [vmem:[#allocation2 + $0x8] sm:$0xff] }
  0x4d   :  { %496 = vmatprep.subr.mxu1 %v116_v3  ;;  %486 = vmatpush3.msra.mxu0 %v122_v2  ;;  %v118_v8 = vld [vmem:[#allocation5] sm:$0xff]  ;;  %v291_v12 = vld [vmem:[#allocation11 + $0x10] sm:$0xff]  ;;  %v290_v14 = vld [vmem:[#allocation11 + $0x8] sm:$0xff] }
  0x4e   :  { %497 = vmatpush3.msra.mxu1 %v116_v3  ;;  %487 = vmatprep.subr.mxu0 %v121_v4  ;;  %v287_v13 = vld [vmem:[#allocation7] sm:$0xff]  ;;  %v289_v15 = vld [vmem:[#allocation11] sm:$0xff]  ;;  %v288_v16 = vld [vmem:[#allocation7 + $0x8] sm:$0xff] }
  0x4f   :  { %498 = vmatprep.subr.mxu1 %v115_v5  ;;  %488 = vmatpush3.msra.mxu0 %v121_v4  ;;  %v463_v23 = vld [vmem:[%s832_s6] ss:$0 sm:$0xff]  ;;  %s719_s6 = smov [#allocation13]  }
  0x50   :  { %499 = vmatpush3.msra.mxu1 %v115_v5  ;;  %489 = vmatprep.subr.mxu0 %v120_v6  ;;  %s426_s14 = sshll.u32 %s719_s6, 4  ;;  %s427_s14 = int_to_ptr.vmem [resolvable:$true] %s426_s14 }
  0x51   :  { %500 = vmatprep.subr.mxu1 %v114_v7  ;;  %490 = vmatpush3.msra.mxu0 %v120_v6  ;;  %s658_s16 = scalar_lea.vmem %s427_s14, 256  ;;  %p663_p3 = scmp.lt.s32.totalorder %s427_s14, %s427_s14 }
  0x52   :  { %491 = vmatprep.mubr.msk.f32.mxu0 %vm124_vm0, %v118_v8  ;;  %501 = vmatpush3.msra.mxu1 %v114_v7  ;;  %p659_p2 = scmp.ne.s32.totalorder %s427_s14, %s658_s16  ;;  %p664_p4 = scmp.lt.s32.totalorder %s658_s16, %s658_s16 }
  0x53   :  { %502 = vmatprep.mubr.msk.f32.mxu1 %vm124_vm0, %v112_v9  ;;  %492 = vmatmul.mubr.msk.f32.vlgmr.msra.gmra.mxu0 %vm124_vm0, %v119_v10 }
  0x54   :  { %503 = vmatmul.mubr.msk.f32.vlgmr.msra.gmra.mxu1 %vm124_vm0, %v113_v11  ;;  %505 = vmatprep.subr.mxu0 %v291_v12  ;;  %p665_p5 = por %p664_p4, %p663_p3 }
  0x55   :  { %511 = vmatprep.mubr.msk.f32.mxu0 %vm292_vm1, %v287_v13  ;;  %506 = vmatpush3.msra.mxu0 %v291_v12 }
  0x56   :  { %507 = vmatprep.subr.mxu0 %v290_v14  ;;  %p666_p6 = pnand %p665_p5, %p659_p2 }
  0x57   :  { %508 = vmatpush3.msra.mxu0 %v290_v14 }
  0x58   :  { %509 = vmatprep.subr.mxu0 %v289_v15 }
  0x59   :  { %510 = vmatpush3.msra.mxu0 %v289_v15 }
  0x5a   :  { %512 = vmatmul.mubr.msk.f32.vlgmr.msra.gmra.mxu0 %vm292_vm1, %v288_v16 }
 0x113   :  { %v493_v17 = vpop.f32.mrf.mxu0 }
 0x114   :  { %v504_v18 = vpop.f32.mrf.mxu1 }
 0x115   :  { %v197_v19 = vpop.f32.mrf.mxu0  ;;  %v284_v21 = vadd.f32 %v504_v18, %v493_v17 }
 0x116   :  { %v278_v20 = vpop.f32.mrf.mxu1 }
 0x117   :  { %v279_v24 = vadd.f32 %v278_v20, %v197_v19 }
 0x11a   :  { %v513_v22 = vpop.f32.mrf.mxu0 }
 0x11b   :  { %v375_v25 = vadd.f32 %v513_v22, %v284_v21 }
 0x11c   :  { %v365_v26 = vpop.f32.mrf.mxu0 }
 0x11d   :  { %v384_v27 = vadd.f32 %v463_v23, %v375_v25  ;;  %v374_v28 = vadd.f32 %v365_v26, %v279_v24 }
 0x11f   :  { %v465_v29 = vmul.f32 -1.442695, %v384_v27  ;;  %v383_v30 = vadd.f32 %v463_v23, %v374_v28 }
 0x121   :  { %v464_v31 = vmul.f32 -1.442695, %v383_v30  ;;  %526 = vpow2.f32 %v465_v29 }
 0x123   :  { %528 = vpow2.f32 %v464_v31 }
 0x12e   :  { %v527_v32 = vpop.eup %526 }
 0x12f   :  { %v394_v35 = vadd.f32 1.0, %v527_v32 }
 0x130   :  { %v529_v33 = vpop.eup %528 }
 0x131   :  { %v393_v34 = vadd.f32 1.0, %v529_v33 }
 0x133   :  { %530 = vrcp.f32 %v393_v34 }
 0x134   :  { %532 = vrcp.f32 %v394_v35 }
 0x135   :  { %534 = vtanh.f32 %v383_v30 }
 0x136   :  { %536 = vtanh.f32 %v384_v27 }
 0x140   :  { %v531_v36 = vpop.eup %530 }
 0x141   :  { %401 = vrot.lane.b32.xlu0 %v531_v36, %s718_s13  ;;  %v533_v37 = vpop.eup %532 }
 0x142   :  { %v535_v38 = vpop.eup %534 }
 0x143   :  { %v537_v41 = vpop.eup %536 }
 0x145   :  { %403 = vrot.lane.b32.xlu0 %v533_v37, %s718_s13 }
 0x1b3   :  { %v402_v39 = vpop.permute.xlu0 %401 }
 0x1b4   :  { %v407_v40 = vmul.f32 %v535_v38, %v402_v39 }
 0x1b6   :  { %409 = vst.msk [vmem:[#allocation13] sm:$0xff] %vm124_vm0, %v407_v40  ;;  %413 = vrot.lane.b32.xlu1 %v407_v40, %s720_s15 }
 0x1b7   :  { %v404_v42 = vpop.permute.xlu0 %403 }
 0x1b8   :  { %v408_v43 = vmul.f32 %v537_v41, %v404_v42 }
 0x1ba   :  { %410 = vst.msk [vmem:[#allocation13 + $0x8] sm:$0xff] %vm124_vm0, %v408_v43  ;;  %415 = vrot.lane.b32.xlu1 %v408_v43, %s720_s15 }
 0x1bb   :  { %669 = shalt.err (!%p666_p6)
}
 0x1bc   :  { %432 = dma.vmem_to_hbm [thread:$0]  %s427_s14, 256, %s833_s7, [#allocation4], %s712_s10, %s712_s10, %s713_s11  }
 0x1bd   :  { %s721_s19 = smov [#allocation14]  }
 0x1be   :  { %s438_s20 = sshll.u32 %s721_s19, 4  ;;  %s439_s20 = int_to_ptr.vmem [resolvable:$true] %s438_s20 }
 0x1bf   :  { %s678_s1 = scalar_lea.vmem %s439_s20, 256  ;;  %p683_p8 = scmp.lt.s32.totalorder %s439_s20, %s439_s20 }
 0x1c0   :  { %p679_p7 = scmp.ne.s32.totalorder %s439_s20, %s678_s1  ;;  %p684_p9 = scmp.lt.s32.totalorder %s678_s1, %s678_s1 }
 0x1c2   :  { %p685_p10 = por %p684_p9, %p683_p8 }
 0x1c4   :  { %p686_p11 = pnand %p685_p10, %p679_p7 }
 0x228   :  { %v414_v44 = vpop.permute.xlu1 %413 }
 0x229   :  { %419 = vst.msk [vmem:[#allocation14] sm:$0xff] %vm124_vm0, %v414_v44 }
 0x22c   :  { %v416_v45 = vpop.permute.xlu1 %415 }
 0x22d   :  { %420 = vst.msk [vmem:[#allocation14 + $0x8] sm:$0xff] %vm124_vm0, %v416_v45 }
 0x22e   :  { %689 = shalt.err (!%p686_p11)
}
 0x22f   :  { %444 = dma.vmem_to_hbm [thread:$0]  %s439_s20, 256, %s834_s8, [#allocation15], %s712_s10, %s712_s10, %s713_s11  }
 0x230   :  { %706 = dma.done.wait [#allocation4], 256  }
 0x231   :  { %707 = vsyncadd [#allocation4], 4294967040 }
 0x232   :  { %708 = dma.done.wait [#allocation15], 256  }
 0x233   :  { %709 = vsyncadd [#allocation15], 4294967040 }
 0x234   :  { %451 = vsyncpa [#allocation3], 1 }
 0x235   :  { %452 = vsyncpa [#allocation6], 1 }
 0x236   :  { %453 = vsyncpa [#allocation9], 1 }
 0x237   :  { %454 = vsyncpa [#allocation12], 1 }
 0x238   :  { %455 = vsyncpa [#allocation4], 1 }
 0x239   :  { %456 = vsyncpa [#allocation15], 1 }

</bundles_post_ra>
